<compile_context>
chip_gen: v6e
topology: v6e:2x2x1
jax: 0.10.0
libtpu: 0.0.40
codegen_flags: <defaults>
</compile_context>

<pallas_src>
import functools

import jax
import jax.numpy as jnp
from jax.experimental import pallas as pl
from jax.experimental.pallas import tpu as pltpu


# ----------------------------------------------------------------------------
# helpers
# ----------------------------------------------------------------------------
def _round_up(x: int, m: int) -> int:
    return ((x + m - 1) // m) * m


def _tpu_generation():
    """Returns (device_kind_lowercase, vmem_capacity_bytes)."""
    kind = ""
    try:
        kind = jax.devices()[0].device_kind.lower()
    except Exception:
        pass
    vmem_cap = None
    try:
        vmem_cap = int(pltpu.get_tpu_info().vmem_capacity_bytes)
    except Exception:
        vmem_cap = None
    if not vmem_cap or vmem_cap <= 0:
        vmem_cap = 64 << 20  # conservative default: assume v7x per-core VMEM
    return kind, vmem_cap


def _choose_tile_n(n: int, kind: str) -> int:
    # v5-class (and unknown/older) chips: 128-row tiles (4x128x128 MXU, tighter
    # f32 activation footprint).  v6e/v7x: allow up to 512 rows so large batches
    # get closer to the HBM roofline and amortize per-grid-step overhead.
    max_tile = 512 if ("v6" in kind or "v7" in kind) else 128
    if n < 128:
        # bf16 packs 16 sublanes per vreg -> round tiny batches to 16 rows
        return min(_round_up(max(n, 16), 16), max_tile)
    for cand in (512, 256, 128):
        if cand <= max_tile and cand <= n:
            return cand
    return 128


def _estimate_vmem_bytes(tile_n, in_pad, hid_pad, out_pad, n_hidden, weight_bufs):
    # resident bf16 weights + packed f32 biases (x weight_bufs pipeline buffers)
    w_bytes = 2 * (in_pad * hid_pad + n_hidden * hid_pad * hid_pad + hid_pad * out_pad)
    b_bytes = 4 * ((n_hidden + 1) * hid_pad + out_pad)
    resident = weight_bufs * (w_bytes + b_bytes)
    # double-buffered bf16 x tile and f32 out tile
    io_bytes = 2 * (2 * tile_n * in_pad) + 2 * (4 * tile_n * out_pad)
    # live f32 + bf16 activation copies inside the body
    act_bytes = 6 * tile_n * hid_pad + 6 * tile_n * out_pad
    return resident + io_bytes + act_bytes


# ----------------------------------------------------------------------------
# kernel
# ----------------------------------------------------------------------------
def make_mlp_kernel(n_hidden: int, act: str):
    """Kernel ref order: x, b_hid (packed), b2, W1, [Wi]*n_hidden, W2, out.

    Weights are bf16 and VMEM-resident; matmuls accumulate in f32 on the MXU.
    BN is already folded into the weights; dropout is identity (eval).  The
    padded softmax columns carry a -1e30 bias, so no in-kernel masking needed.
    """

    def apply_act(h):
        if act == "relu":
            return jnp.maximum(h, 0.0)
        if act == "leakyrelu":
            return jnp.where(h > 0, h, 0.01 * h)
        if act == "sigmoid":
            return jax.nn.sigmoid(h)
        if act == "tanh":
            return jnp.tanh(h)
        raise ValueError("no valid activation function selected!")

    def kernel(x_ref, bhid_ref, b2_ref, *rest):
        w_refs, out_ref = rest[:-1], rest[-1]
        x = x_ref[...]                     # bf16 (tile_n, in_pad)
        b_hid = bhid_ref[...]              # f32  (n_hidden+1, hid_pad)

        w1 = w_refs[0][...]                # bf16
        h = jnp.dot(x, w1, preferred_element_type=jnp.float32) + b_hid[0:1, :]
        h = apply_act(h)

        for li in range(n_hidden):
            w = w_refs[1 + li][...]
            h = jnp.dot(h.astype(w.dtype), w,
                        preferred_element_type=jnp.float32) + b_hid[li + 1:li + 2, :]
            h = apply_act(h)
            # BatchNorm folded into (w, b) on the wrapper side; dropout = identity

        w2 = w_refs[n_hidden + 1][...]
        # padded columns have bias -1e30 -> exp() == 0, so softmax over dim=1
        # matches the real out_dim with no per-tile iota/compare/select.
        logits = jnp.dot(h.astype(w2.dtype), w2,
                         preferred_element_type=jnp.float32) + b2_ref[...]
        m = jnp.max(logits, axis=1, keepdims=True)
        e = jnp.exp(logits - m)
        out_ref[...] = e / jnp.sum(e, axis=1, keepdims=True)   # exact normalization

    return kernel


# ----------------------------------------------------------------------------
# wrapper-side parameter preparation
# ----------------------------------------------------------------------------
def fold_bn_into_linears(params, n_hidden: int, use_bn: bool, eps: float = 1e-5):
    """Flat param list -> list of (W, b) with eval-mode BN folded into the NEXT linear."""
    linears = []
    idx = 0
    pending = None  # (per-input-feature scale, shift row) from the preceding BN
    n_linear = n_hidden + 2
    for li in range(n_linear):
        w = params[idx]
        b = params[idx + 1].reshape(1, -1)
        idx += 2
        if pending is not None:
            s, t = pending
            b = b + jnp.dot(t, w)          # shift goes through the ORIGINAL W
            w = s[:, None] * w             # per-row scale folded into W
            pending = None
        linears.append((w, b))
        # a BatchNorm follows every hidden linear (linears 1..n_hidden)
        if use_bn and 1 <= li <= n_hidden:
            gamma = params[idx].reshape(1, -1)
            beta = params[idx + 1].reshape(1, -1)
            mean = params[idx + 2].reshape(1, -1)
            var = params[idx + 3].reshape(1, -1)
            idx += 4
            s = gamma * jax.lax.rsqrt(var + eps)
            t = beta - mean * s
            pending = (s.reshape(-1), t)
    return linears


def pack_params(linears, dims_in, dims_out):
    """Pad each linear to lane-aligned dims; weights -> bf16, biases stay f32.

    The n_linear-1 hidden-width biases are packed into one (n_linear-1, hid_pad)
    array; the padded tail of the final bias is set to -1e30 (f32 only — the
    bf16 W2 padding stays zero) so padded softmax lanes vanish.
    """
    n_linear = len(linears)
    hid_pad = dims_out[0]
    weights = []
    bhid = jnp.zeros((n_linear - 1, hid_pad), jnp.float32)
    b2 = None
    for li, ((w, b), di, do) in enumerate(zip(linears, dims_in, dims_out)):
        wp = jnp.zeros((di, do), jnp.float32).at[: w.shape[0], : w.shape[1]].set(w)
        weights.append(wp.astype(jnp.bfloat16))
        if li < n_linear - 1:
            bhid = bhid.at[li, : b.shape[1]].set(b[0])
        else:
            b2 = jnp.full((1, do), -1e30, jnp.float32).at[:, : b.shape[1]].set(b)
    return weights, bhid, b2


# ----------------------------------------------------------------------------
# forward
# ----------------------------------------------------------------------------
def mlp_forward(x, params, *, n_hidden: int, use_bn: bool, out_dim: int,
                act: str = "relu", eps: float = 1e-5, single_buffer_weights: bool = True):
    """params is the flat f32 list produced by init_params (PyTorch-equivalent)."""
    n, in_dim = x.shape
    hid_dim = params[0].shape[1]

    kind, vmem_cap = _tpu_generation()

    # 1) fold eval-mode BN into the following linears (numerically identical)
    linears = fold_bn_into_linears(params, n_hidden, use_bn, eps)

    # 2) pad feature dims to the 128-lane width, cast weights to bf16
    in_pad = _round_up(in_dim, 128)
    hid_pad = _round_up(hid_dim, 128)
    out_pad = _round_up(out_dim, 128)
    dims_in = [in_pad] + [hid_pad] * (n_hidden + 1)
    dims_out = [hid_pad] * (n_hidden + 1) + [out_pad]
    weights, bhid, b2 = pack_params(linears, dims_in, dims_out)

    # 3) chip-aware batch tiling (grid over rows; weights stay VMEM-resident)
    tile_n = _choose_tile_n(n, kind)
    if "v7" in kind:
        # 2 TensorCores/chip: keep >=4 grid steps so each TC pipelines >=2 tiles
        while tile_n >= 256 and _round_up(n, tile_n) // tile_n < 4:
            tile_n //= 2
    n_pad = _round_up(n, tile_n)
    xp = (jnp.zeros((n_pad, in_pad), jnp.float32)
          .at[:n, :in_dim].set(x)
          .astype(jnp.bfloat16))

    def resident_spec(shape):
        # constant index map: the block never changes across the batch grid, so
        # a single buffer suffices (no double-buffering of the weight stack).
        if single_buffer_weights:
            return pl.BlockSpec(shape, lambda i: (0, 0), pipeline_mode=pl.Buffered(1))
        return pl.BlockSpec(shape, lambda i: (0, 0))

    in_specs = [pl.BlockSpec((tile_n, in_pad), lambda i: (i, 0)),  # x tile (pipelined)
                resident_spec(bhid.shape),                          # packed hidden biases
                resident_spec(b2.shape)]                            # final bias (+ mask)
    in_specs += [resident_spec(w.shape) for w in weights]
    out_spec = pl.BlockSpec((tile_n, out_pad), lambda i: (i, 0))

    kernel = make_mlp_kernel(n_hidden, act)

    weight_bufs = 1 if single_buffer_weights else 2
    est = _estimate_vmem_bytes(tile_n, in_pad, hid_pad, out_pad, n_hidden, weight_bufs)
    vmem_limit = int(min(0.85 * vmem_cap, max(32 << 20, 2 * est)))
    # TODO(synk): if the resident weight stack ever exceeds ~0.6x VMEM (v7x),
    # stream layer weights with a manual make_async_copy double-buffer instead
    # of keeping the whole stack resident; not needed at these shapes.

    out_padded = pl.pallas_call(
        kernel,
        out_shape=jax.ShapeDtypeStruct((n_pad, out_pad), jnp.float32),
        grid_spec=pltpu.PrefetchScalarGridSpec(
            num_scalar_prefetch=0,
            grid=(n_pad // tile_n,),
            in_specs=in_specs,
            out_specs=out_spec,
        ),
        compiler_params=pltpu.CompilerParams(
            dimension_semantics=("parallel",),   # lets v7x shard batch tiles across 2 TCs
            vmem_limit_bytes=vmem_limit,
        ),
    )(xp, bhid, b2, *weights)

    return out_padded[:n, :out_dim]


# ----------------------------------------------------------------------------
# PyTorch-equivalent init + pure-JAX reference
# ----------------------------------------------------------------------------
def init_params(key, in_dim, hid_dim, out_dim, n_layers, use_bn):
    """Deterministic parameter init. Linear weights stored as [in, out]."""
    n_hidden = n_layers - 1
    keys = jax.random.split(key, 2 * (n_hidden + 2))
    k = iter(keys)

    def linear(fan_in, fan_out):
        bound = 1.0 / jnp.sqrt(fan_in)
        w = jax.random.uniform(next(k), (fan_in, fan_out), jnp.float32, -bound, bound)
        b = jax.random.uniform(next(k), (1, fan_out), jnp.float32, -bound, bound)
        return w, b

    params = []
    w1, b1 = linear(in_dim, hid_dim)
    params += [w1, b1]
    for _ in range(n_hidden):
        w, b = linear(hid_dim, hid_dim)
        params += [w, b]
        if use_bn:
            params += [
                jnp.ones((1, hid_dim), jnp.float32),   # gamma
                jnp.zeros((1, hid_dim), jnp.float32),  # beta
                jnp.zeros((1, hid_dim), jnp.float32),  # running_mean
                jnp.ones((1, hid_dim), jnp.float32),   # running_var
            ]
    w2, b2 = linear(hid_dim, out_dim)
    params += [w2, b2]
    return params


def mlp_reference(x, params, *, n_hidden, use_bn, act="relu", eps=1e-5):
    """Pure-JAX f32 reference matching the PyTorch forward (eval mode)."""
    def act_fn(h):
        if act == "relu":
            return jnp.maximum(h, 0.0)
        if act == "leakyrelu":
            return jnp.where(h > 0, h, 0.01 * h)
        if act == "sigmoid":
            return jax.nn.sigmoid(h)
        if act == "tanh":
            return jnp.tanh(h)
        raise ValueError("no valid activation function selected!")

    idx = 0
    w, b = params[idx], params[idx + 1]; idx += 2
    h = act_fn(x @ w + b)
    for _ in range(n_hidden):
        w, b = params[idx], params[idx + 1]; idx += 2
        h = act_fn(h @ w + b)
        if use_bn:
            gamma, beta, mean, var = params[idx:idx + 4]; idx += 4
            h = (h - mean) * jax.lax.rsqrt(var + eps) * gamma + beta
        # dropout identity (eval)
    w, b = params[idx], params[idx + 1]
    return jax.nn.softmax(h @ w + b, axis=1)


# ----------------------------------------------------------------------------
# main
# ----------------------------------------------------------------------------
if __name__ == "__main__":
    configs = [
        # small demo config
        dict(batch=8, in_dim=16, hid_dim=32, out_dim=8, n_layers=3, use_bn=True),
        # larger config exercising the batch grid / resident-weight pipeline
        dict(batch=512, in_dim=64, hid_dim=256, out_dim=32, n_layers=4, use_bn=True),
    ]

    key = jax.random.PRNGKey(0)
    for cfg in configs:
        key, kx, kp = jax.random.split(key, 3)
        x = jax.random.normal(kx, (cfg["batch"], cfg["in_dim"]), jnp.float32)
        params = init_params(kp, cfg["in_dim"], cfg["hid_dim"], cfg["out_dim"],
                             cfg["n_layers"], cfg["use_bn"])
        n_hidden = cfg["n_layers"] - 1

        def run(single_buffer):
            fwd = jax.jit(functools.partial(
                mlp_forward, n_hidden=n_hidden, use_bn=cfg["use_bn"],
                out_dim=cfg["out_dim"], act="relu",
                single_buffer_weights=single_buffer))
            out = fwd(x, params)
            jax.block_until_ready(out)
            return out

        try:
            out = run(True)
        except Exception:
            # jax build without BlockSpec pipeline_mode / Buffered(1) support:
            # fall back to default (double-buffered) resident weights.
            out = run(False)

        ref = mlp_reference(x, params, n_hidden=n_hidden, use_bn=cfg["use_bn"], act="relu")

        assert out.shape == (cfg["batch"], cfg["out_dim"])
        # exact-divide softmax: rows sum to 1 at f32 precision
        assert jnp.allclose(jnp.sum(out, axis=1), 1.0, atol=1e-4)
        max_err = float(jnp.max(jnp.abs(out - ref)))
        assert max_err < 3e-2, f"max abs error vs f32 reference: {max_err}"

    print("KERNEL_OK")
</pallas_src>

<mosaic_0001>
module attributes {stable_mosaic.version = 11 : i64} {
  func.func @kernel(%arg0: i32, %arg1: memref<16x128xbf16, #tpu.memory_space<vmem>>, %arg2: memref<3x128xf32, #tpu.memory_space<vmem>>, %arg3: memref<1x128xf32, #tpu.memory_space<vmem>>, %arg4: memref<128x128xbf16, #tpu.memory_space<vmem>>, %arg5: memref<128x128xbf16, #tpu.memory_space<vmem>>, %arg6: memref<128x128xbf16, #tpu.memory_space<vmem>>, %arg7: memref<128x128xbf16, #tpu.memory_space<vmem>>, %arg8: memref<16x128xf32, #tpu.memory_space<vmem>>) attributes {dimension_semantics = [#tpu.dimension_semantics<parallel>], iteration_bounds = array<i64: 1>, scalar_prefetch = 0 : i64, scratch_operands = 0 : i64, tpu.core_type = #tpu.core_type<tc>, window_params = [{transform_indices = @transform_0, window_bounds = array<i64: 16, 128>}, {pipeline_mode = #tpu.pipeline_mode<synchronous>, transform_indices = @transform_1, window_bounds = array<i64: 3, 128>}, {pipeline_mode = #tpu.pipeline_mode<synchronous>, transform_indices = @transform_2, window_bounds = array<i64: 1, 128>}, {pipeline_mode = #tpu.pipeline_mode<synchronous>, transform_indices = @transform_3, window_bounds = array<i64: 128, 128>}, {pipeline_mode = #tpu.pipeline_mode<synchronous>, transform_indices = @transform_4, window_bounds = array<i64: 128, 128>}, {pipeline_mode = #tpu.pipeline_mode<synchronous>, transform_indices = @transform_5, window_bounds = array<i64: 128, 128>}, {pipeline_mode = #tpu.pipeline_mode<synchronous>, transform_indices = @transform_6, window_bounds = array<i64: 128, 128>}, {transform_indices = @transform_7, window_bounds = array<i64: 16, 128>}]} {
    %c0 = arith.constant 0 : index
    %c0_0 = arith.constant 0 : index
    %0 = vector.load %arg1[%c0, %c0_0] : memref<16x128xbf16, #tpu.memory_space<vmem>>, vector<16x128xbf16>
    %c0_1 = arith.constant 0 : index
    %c0_2 = arith.constant 0 : index
    %1 = vector.load %arg2[%c0_1, %c0_2] : memref<3x128xf32, #tpu.memory_space<vmem>>, vector<3x128xf32>
    %c0_3 = arith.constant 0 : index
    %c0_4 = arith.constant 0 : index
    %2 = vector.load %arg4[%c0_3, %c0_4] : memref<128x128xbf16, #tpu.memory_space<vmem>>, vector<128x128xbf16>
    %cst = arith.constant dense<0.000000e+00> : vector<16x128xf32>
    %3 = tpu.matmul %0, %2, %cst {dimension_numbers = #tpu.dot_dimension_numbers<[1], [0], [0], [1], [0, 0, 1, 1], [], []>} : vector<16x128xbf16>, vector<128x128xbf16>, vector<16x128xf32> -> vector<16x128xf32>
    %4 = vector.extract_strided_slice %1 {offsets = [0, 0], sizes = [1, 128], strides = [1, 1]} : vector<3x128xf32> to vector<1x128xf32>
    %5 = vector.broadcast %4 : vector<1x128xf32> to vector<16x128xf32>
    %6 = arith.addf %3, %5 : vector<16x128xf32>
    %cst_5 = arith.constant 0.000000e+00 : f32
    %7 = vector.broadcast %cst_5 : f32 to vector<16x128xf32>
    %8 = arith.maximumf %6, %7 : vector<16x128xf32>
    %c0_6 = arith.constant 0 : index
    %c0_7 = arith.constant 0 : index
    %9 = vector.load %arg5[%c0_6, %c0_7] : memref<128x128xbf16, #tpu.memory_space<vmem>>, vector<128x128xbf16>
    %10 = arith.truncf %8 : vector<16x128xf32> to vector<16x128xbf16>
    %cst_8 = arith.constant dense<0.000000e+00> : vector<16x128xf32>
    %11 = tpu.matmul %10, %9, %cst_8 {dimension_numbers = #tpu.dot_dimension_numbers<[1], [0], [0], [1], [0, 0, 1, 1], [], []>} : vector<16x128xbf16>, vector<128x128xbf16>, vector<16x128xf32> -> vector<16x128xf32>
    %12 = vector.extract_strided_slice %1 {offsets = [1, 0], sizes = [1, 128], strides = [1, 1]} : vector<3x128xf32> to vector<1x128xf32>
    %13 = vector.broadcast %12 : vector<1x128xf32> to vector<16x128xf32>
    %14 = arith.addf %11, %13 : vector<16x128xf32>
    %cst_9 = arith.constant 0.000000e+00 : f32
    %15 = vector.broadcast %cst_9 : f32 to vector<16x128xf32>
    %16 = arith.maximumf %14, %15 : vector<16x128xf32>
    %c0_10 = arith.constant 0 : index
    %c0_11 = arith.constant 0 : index
    %17 = vector.load %arg6[%c0_10, %c0_11] : memref<128x128xbf16, #tpu.memory_space<vmem>>, vector<128x128xbf16>
    %18 = arith.truncf %16 : vector<16x128xf32> to vector<16x128xbf16>
    %cst_12 = arith.constant dense<0.000000e+00> : vector<16x128xf32>
    %19 = tpu.matmul %18, %17, %cst_12 {dimension_numbers = #tpu.dot_dimension_numbers<[1], [0], [0], [1], [0, 0, 1, 1], [], []>} : vector<16x128xbf16>, vector<128x128xbf16>, vector<16x128xf32> -> vector<16x128xf32>
    %20 = vector.extract_strided_slice %1 {offsets = [2, 0], sizes = [1, 128], strides = [1, 1]} : vector<3x128xf32> to vector<1x128xf32>
    %21 = vector.broadcast %20 : vector<1x128xf32> to vector<16x128xf32>
    %22 = arith.addf %19, %21 : vector<16x128xf32>
    %cst_13 = arith.constant 0.000000e+00 : f32
    %23 = vector.broadcast %cst_13 : f32 to vector<16x128xf32>
    %24 = arith.maximumf %22, %23 : vector<16x128xf32>
    %c0_14 = arith.constant 0 : index
    %c0_15 = arith.constant 0 : index
    %25 = vector.load %arg7[%c0_14, %c0_15] : memref<128x128xbf16, #tpu.memory_space<vmem>>, vector<128x128xbf16>
    %26 = arith.truncf %24 : vector<16x128xf32> to vector<16x128xbf16>
    %cst_16 = arith.constant dense<0.000000e+00> : vector<16x128xf32>
    %27 = tpu.matmul %26, %25, %cst_16 {dimension_numbers = #tpu.dot_dimension_numbers<[1], [0], [0], [1], [0, 0, 1, 1], [], []>} : vector<16x128xbf16>, vector<128x128xbf16>, vector<16x128xf32> -> vector<16x128xf32>
    %c0_17 = arith.constant 0 : index
    %c0_18 = arith.constant 0 : index
    %28 = vector.load %arg3[%c0_17, %c0_18] : memref<1x128xf32, #tpu.memory_space<vmem>>, vector<1x128xf32>
    %29 = vector.broadcast %28 : vector<1x128xf32> to vector<16x128xf32>
    %30 = arith.addf %27, %29 : vector<16x128xf32>
    %cst_19 = arith.constant dense<0xFF800000> : vector<16xf32>
    %31 = vector.multi_reduction <maximumf>, %30, %cst_19 [1] : vector<16x128xf32> to vector<16xf32>
    %32 = vector.shape_cast %31 : vector<16xf32> to vector<16x1xf32>
    %33 = vector.broadcast %32 : vector<16x1xf32> to vector<16x128xf32>
    %34 = arith.subf %30, %33 : vector<16x128xf32>
    %35 = math.exp %34 : vector<16x128xf32>
    %cst_20 = arith.constant dense<0.000000e+00> : vector<16xf32>
    %36 = vector.multi_reduction <add>, %35, %cst_20 [1] : vector<16x128xf32> to vector<16xf32>
    %37 = vector.shape_cast %36 : vector<16xf32> to vector<16x1xf32>
    %38 = vector.broadcast %37 : vector<16x1xf32> to vector<16x128xf32>
    %39 = arith.divf %35, %38 : vector<16x128xf32>
    %c0_21 = arith.constant 0 : index
    %c0_22 = arith.constant 0 : index
    %40 = vector.load %arg8[%c0_21, %c0_22] : memref<16x128xf32, #tpu.memory_space<vmem>>, vector<16x128xf32>
    tpu.vector_store %arg8[%c0_21, %c0_22], %39 {strides = array<i32>} : memref<16x128xf32, #tpu.memory_space<vmem>>, vector<16x128xf32>,
    return
  }
  func.func @transform_0(%arg0: i32) -> (i32, i32) {
    %c0_i32 = arith.constant 0 : i32
    %c0_i32_0 = arith.constant 0 : i32
    return %arg0, %c0_i32 : i32, i32
  }
  func.func @transform_1(%arg0: i32) -> (i32, i32) {
    %c0_i32 = arith.constant 0 : i32
    %c0_i32_0 = arith.constant 0 : i32
    %c0_i32_1 = arith.constant 0 : i32
    return %c0_i32, %c0_i32_0 : i32, i32
  }
  func.func @transform_2(%arg0: i32) -> (i32, i32) {
    %c0_i32 = arith.constant 0 : i32
    %c0_i32_0 = arith.constant 0 : i32
    %c0_i32_1 = arith.constant 0 : i32
    return %c0_i32, %c0_i32_0 : i32, i32
  }
  func.func @transform_3(%arg0: i32) -> (i32, i32) {
    %c0_i32 = arith.constant 0 : i32
    %c0_i32_0 = arith.constant 0 : i32
    %c0_i32_1 = arith.constant 0 : i32
    return %c0_i32, %c0_i32_0 : i32, i32
  }
  func.func @transform_4(%arg0: i32) -> (i32, i32) {
    %c0_i32 = arith.constant 0 : i32
    %c0_i32_0 = arith.constant 0 : i32
    %c0_i32_1 = arith.constant 0 : i32
    return %c0_i32, %c0_i32_0 : i32, i32
  }
  func.func @transform_5(%arg0: i32) -> (i32, i32) {
    %c0_i32 = arith.constant 0 : i32
    %c0_i32_0 = arith.constant 0 : i32
    %c0_i32_1 = arith.constant 0 : i32
    return %c0_i32, %c0_i32_0 : i32, i32
  }
  func.func @transform_6(%arg0: i32) -> (i32, i32) {
    %c0_i32 = arith.constant 0 : i32
    %c0_i32_0 = arith.constant 0 : i32
    %c0_i32_1 = arith.constant 0 : i32
    return %c0_i32, %c0_i32_0 : i32, i32
  }
  func.func @transform_7(%arg0: i32) -> (i32, i32) {
    %c0_i32 = arith.constant 0 : i32
    %c0_i32_0 = arith.constant 0 : i32
    return %arg0, %c0_i32 : i32, i32
  }
}

module attributes {stable_mosaic.version = 11 : i64} {
  func.func @kernel(%arg0: i32, %arg1: memref<16x128xbf16, #tpu.memory_space<vmem>>, %arg2: memref<3x128xf32, #tpu.memory_space<vmem>>, %arg3: memref<1x128xf32, #tpu.memory_space<vmem>>, %arg4: memref<128x128xbf16, #tpu.memory_space<vmem>>, %arg5: memref<128x128xbf16, #tpu.memory_space<vmem>>, %arg6: memref<128x128xbf16, #tpu.memory_space<vmem>>, %arg7: memref<128x128xbf16, #tpu.memory_space<vmem>>, %arg8: memref<16x128xf32, #tpu.memory_space<vmem>>) attributes {dimension_semantics = [#tpu.dimension_semantics<parallel>], iteration_bounds = array<i64: 1>, scalar_prefetch = 0 : i64, scratch_operands = 0 : i64, tpu.core_type = #tpu.core_type<tc>, window_params = [{transform_indices = @transform_0, window_bounds = array<i64: 16, 128>}, {pipeline_mode = #tpu.pipeline_mode<synchronous>, transform_indices = @transform_1, window_bounds = array<i64: 3, 128>}, {pipeline_mode = #tpu.pipeline_mode<synchronous>, transform_indices = @transform_2, window_bounds = array<i64: 1, 128>}, {pipeline_mode = #tpu.pipeline_mode<synchronous>, transform_indices = @transform_3, window_bounds = array<i64: 128, 128>}, {pipeline_mode = #tpu.pipeline_mode<synchronous>, transform_indices = @transform_4, window_bounds = array<i64: 128, 128>}, {pipeline_mode = #tpu.pipeline_mode<synchronous>, transform_indices = @transform_5, window_bounds = array<i64: 128, 128>}, {pipeline_mode = #tpu.pipeline_mode<synchronous>, transform_indices = @transform_6, window_bounds = array<i64: 128, 128>}, {transform_indices = @transform_7, window_bounds = array<i64: 16, 128>}]} {
    %c0 = arith.constant 0 : index
    %c0_0 = arith.constant 0 : index
    %0 = vector.load %arg1[%c0, %c0_0] : memref<16x128xbf16, #tpu.memory_space<vmem>>, vector<16x128xbf16>
    %c0_1 = arith.constant 0 : index
    %c0_2 = arith.constant 0 : index
    %1 = vector.load %arg2[%c0_1, %c0_2] : memref<3x128xf32, #tpu.memory_space<vmem>>, vector<3x128xf32>
    %c0_3 = arith.constant 0 : index
    %c0_4 = arith.constant 0 : index
    %2 = vector.load %arg4[%c0_3, %c0_4] : memref<128x128xbf16, #tpu.memory_space<vmem>>, vector<128x128xbf16>
    %cst = arith.constant dense<0.000000e+00> : vector<16x128xf32>
    %3 = tpu.matmul %0, %2, %cst {dimension_numbers = #tpu.dot_dimension_numbers<[1], [0], [0], [1], [0, 0, 1, 1], [], []>} : vector<16x128xbf16>, vector<128x128xbf16>, vector<16x128xf32> -> vector<16x128xf32>
    %4 = vector.extract_strided_slice %1 {offsets = [0, 0], sizes = [1, 128], strides = [1, 1]} : vector<3x128xf32> to vector<1x128xf32>
    %5 = vector.broadcast %4 : vector<1x128xf32> to vector<16x128xf32>
    %6 = arith.addf %3, %5 : vector<16x128xf32>
    %cst_5 = arith.constant 0.000000e+00 : f32
    %7 = vector.broadcast %cst_5 : f32 to vector<16x128xf32>
    %8 = arith.maximumf %6, %7 : vector<16x128xf32>
    %c0_6 = arith.constant 0 : index
    %c0_7 = arith.constant 0 : index
    %9 = vector.load %arg5[%c0_6, %c0_7] : memref<128x128xbf16, #tpu.memory_space<vmem>>, vector<128x128xbf16>
    %10 = arith.truncf %8 : vector<16x128xf32> to vector<16x128xbf16>
    %cst_8 = arith.constant dense<0.000000e+00> : vector<16x128xf32>
    %11 = tpu.matmul %10, %9, %cst_8 {dimension_numbers = #tpu.dot_dimension_numbers<[1], [0], [0], [1], [0, 0, 1, 1], [], []>} : vector<16x128xbf16>, vector<128x128xbf16>, vector<16x128xf32> -> vector<16x128xf32>
    %12 = vector.extract_strided_slice %1 {offsets = [1, 0], sizes = [1, 128], strides = [1, 1]} : vector<3x128xf32> to vector<1x128xf32>
    %13 = vector.broadcast %12 : vector<1x128xf32> to vector<16x128xf32>
    %14 = arith.addf %11, %13 : vector<16x128xf32>
    %cst_9 = arith.constant 0.000000e+00 : f32
    %15 = vector.broadcast %cst_9 : f32 to vector<16x128xf32>
    %16 = arith.maximumf %14, %15 : vector<16x128xf32>
    %c0_10 = arith.constant 0 : index
    %c0_11 = arith.constant 0 : index
    %17 = vector.load %arg6[%c0_10, %c0_11] : memref<128x128xbf16, #tpu.memory_space<vmem>>, vector<128x128xbf16>
    %18 = arith.truncf %16 : vector<16x128xf32> to vector<16x128xbf16>
    %cst_12 = arith.constant dense<0.000000e+00> : vector<16x128xf32>
    %19 = tpu.matmul %18, %17, %cst_12 {dimension_numbers = #tpu.dot_dimension_numbers<[1], [0], [0], [1], [0, 0, 1, 1], [], []>} : vector<16x128xbf16>, vector<128x128xbf16>, vector<16x128xf32> -> vector<16x128xf32>
    %20 = vector.extract_strided_slice %1 {offsets = [2, 0], sizes = [1, 128], strides = [1, 1]} : vector<3x128xf32> to vector<1x128xf32>
    %21 = vector.broadcast %20 : vector<1x128xf32> to vector<16x128xf32>
    %22 = arith.addf %19, %21 : vector<16x128xf32>
    %cst_13 = arith.constant 0.000000e+00 : f32
    %23 = vector.broadcast %cst_13 : f32 to vector<16x128xf32>
    %24 = arith.maximumf %22, %23 : vector<16x128xf32>
    %c0_14 = arith.constant 0 : index
    %c0_15 = arith.constant 0 : index
    %25 = vector.load %arg7[%c0_14, %c0_15] : memref<128x128xbf16, #tpu.memory_space<vmem>>, vector<128x128xbf16>
    %26 = arith.truncf %24 : vector<16x128xf32> to vector<16x128xbf16>
    %cst_16 = arith.constant dense<0.000000e+00> : vector<16x128xf32>
    %27 = tpu.matmul %26, %25, %cst_16 {dimension_numbers = #tpu.dot_dimension_numbers<[1], [0], [0], [1], [0, 0, 1, 1], [], []>} : vector<16x128xbf16>, vector<128x128xbf16>, vector<16x128xf32> -> vector<16x128xf32>
    %c0_17 = arith.constant 0 : index
    %c0_18 = arith.constant 0 : index
    %28 = vector.load %arg3[%c0_17, %c0_18] : memref<1x128xf32, #tpu.memory_space<vmem>>, vector<1x128xf32>
    %29 = vector.broadcast %28 : vector<1x128xf32> to vector<16x128xf32>
    %30 = arith.addf %27, %29 : vector<16x128xf32>
    %cst_19 = arith.constant dense<0xFF800000> : vector<16xf32>
    %31 = vector.multi_reduction <maximumf>, %30, %cst_19 [1] : vector<16x128xf32> to vector<16xf32>
    %32 = vector.shape_cast %31 : vector<16xf32> to vector<16x1xf32>
    %33 = vector.broadcast %32 : vector<16x1xf32> to vector<16x128xf32>
    %34 = arith.subf %30, %33 : vector<16x128xf32>
    %35 = math.exp %34 : vector<16x128xf32>
    %cst_20 = arith.constant dense<0.000000e+00> : vector<16xf32>
    %36 = vector.multi_reduction <add>, %35, %cst_20 [1] : vector<16x128xf32> to vector<16xf32>
    %37 = vector.shape_cast %36 : vector<16xf32> to vector<16x1xf32>
    %38 = vector.broadcast %37 : vector<16x1xf32> to vector<16x128xf32>
    %39 = arith.divf %35, %38 : vector<16x128xf32>
    %c0_21 = arith.constant 0 : index
    %c0_22 = arith.constant 0 : index
    %40 = vector.load %arg8[%c0_21, %c0_22] : memref<16x128xf32, #tpu.memory_space<vmem>>, vector<16x128xf32>
    tpu.vector_store %arg8[%c0_21, %c0_22], %39 {strides = array<i32>} : memref<16x128xf32, #tpu.memory_space<vmem>>, vector<16x128xf32>,
    return
  }
  func.func @transform_0(%arg0: i32) -> (i32, i32) {
    %c0_i32 = arith.constant 0 : i32
    %c0_i32_0 = arith.constant 0 : i32
    return %arg0, %c0_i32 : i32, i32
  }
  func.func @transform_1(%arg0: i32) -> (i32, i32) {
    %c0_i32 = arith.constant 0 : i32
    %c0_i32_0 = arith.constant 0 : i32
    %c0_i32_1 = arith.constant 0 : i32
    return %c0_i32, %c0_i32_0 : i32, i32
  }
  func.func @transform_2(%arg0: i32) -> (i32, i32) {
    %c0_i32 = arith.constant 0 : i32
    %c0_i32_0 = arith.constant 0 : i32
    %c0_i32_1 = arith.constant 0 : i32
    return %c0_i32, %c0_i32_0 : i32, i32
  }
  func.func @transform_3(%arg0: i32) -> (i32, i32) {
    %c0_i32 = arith.constant 0 : i32
    %c0_i32_0 = arith.constant 0 : i32
    %c0_i32_1 = arith.constant 0 : i32
    return %c0_i32, %c0_i32_0 : i32, i32
  }
  func.func @transform_4(%arg0: i32) -> (i32, i32) {
    %c0_i32 = arith.constant 0 : i32
    %c0_i32_0 = arith.constant 0 : i32
    %c0_i32_1 = arith.constant 0 : i32
    return %c0_i32, %c0_i32_0 : i32, i32
  }
  func.func @transform_5(%arg0: i32) -> (i32, i32) {
    %c0_i32 = arith.constant 0 : i32
    %c0_i32_0 = arith.constant 0 : i32
    %c0_i32_1 = arith.constant 0 : i32
    return %c0_i32, %c0_i32_0 : i32, i32
  }
  func.func @transform_6(%arg0: i32) -> (i32, i32) {
    %c0_i32 = arith.constant 0 : i32
    %c0_i32_0 = arith.constant 0 : i32
    %c0_i32_1 = arith.constant 0 : i32
    return %c0_i32, %c0_i32_0 : i32, i32
  }
  func.func @transform_7(%arg0: i32) -> (i32, i32) {
    %c0_i32 = arith.constant 0 : i32
    %c0_i32_0 = arith.constant 0 : i32
    return %arg0, %c0_i32 : i32, i32
  }
}

</mosaic_0001>

<bundles_post_ra>
// kernel: mlp_forward.1
= control target key start
LH: loop header
LB: loop body
LE: loop exit
PB: predicated region body
PF: predicated region fallthrough
CT: control target
= control target key end

     0   :  { %v701_v0 = vmov 0.0   ;;  %vm702_vm0 = vmmov 0   ;;  %v46_v23 = vlaneseq  ;;  %s894_s3 = inlined_call_operand.vmem [shape: bf16[128,128], index: 3, kind: input, shape index: {}]   ;;  %s895_s4 = inlined_call_operand.vmem [shape: bf16[128,128], index: 4, kind: input, shape index: {}]   ;;  %s896_s0 = inlined_call_operand.vmem [shape: bf16[16,128], index: 0, kind: input, shape index: {}]   ;;  %s897_s5 = inlined_call_operand.vmem [shape: bf16[128,128], index: 5, kind: input, shape index: {}]   ;;  %s898_s1 = inlined_call_operand.vmem [shape: f32[3,128], index: 1, kind: input, shape index: {}]   ;;  %s899_s6 = inlined_call_operand.vmem [shape: bf16[128,128], index: 6, kind: input, shape index: {}]   ;;  %s900_s2 = inlined_call_operand.vmem [shape: f32[1,128], index: 2, kind: input, shape index: {}]   ;;  %s901_s7 = inlined_call_operand.vmem [shape: f32[16,128], index: 7, kind: output, shape index: {}]  }
   0x1   :  { %578 = vmatprep.subr.bf16.mxu0 %v701_v0  ;;  %v660_v1 = vld [vmem:[%s894_s3 + $0x38] sm:$0xff]   ;;  %594 = vmatprep.mubr.msk.bf16.mxu0 %vm702_vm0, %v701_v0  ;;  %v661_v2 = vld [vmem:[%s894_s3 + $0x30] sm:$0xff]   ;;  %v662_v3 = vld [vmem:[%s894_s3 + $0x28] sm:$0xff]  }
   0x2   :  { %598 = vmatprep.subr.bf16.mxu1 %v701_v0  ;;  %614 = vmatprep.mubr.msk.bf16.mxu1 %vm702_vm0, %v701_v0  ;;  %v669_v4 = vld [vmem:[%s895_s4 + $0x38] sm:$0xff]   ;;  %v663_v5 = vld [vmem:[%s894_s3 + $0x20] sm:$0xff]   ;;  %v670_v6 = vld [vmem:[%s895_s4 + $0x30] sm:$0xff]   ;;  %v47_v24 = vshrl.u32 %v46_v23, 7 }
   0x3   :  { %579 = vmatpush3.bf16.msra.mxu0 %v660_v1  ;;  %599 = vmatpush3.bf16.msra.mxu1 %v669_v4  ;;  %v664_v7 = vld [vmem:[%s894_s3 + $0x18] sm:$0xff]   ;;  %v671_v8 = vld [vmem:[%s895_s4 + $0x28] sm:$0xff]   ;;  %v665_v9 = vld [vmem:[%s894_s3 + $0x10] sm:$0xff]  }
   0x4   :  { %580 = vmatprep.subr.bf16.mxu0 %v701_v0  ;;  %600 = vmatprep.subr.bf16.mxu1 %v701_v0  ;;  %v672_v10 = vld [vmem:[%s895_s4 + $0x20] sm:$0xff]   ;;  %v666_v11 = vld [vmem:[%s894_s3 + $0x8] sm:$0xff]   ;;  %v673_v12 = vld [vmem:[%s895_s4 + $0x18] sm:$0xff]   ;;  %v48_v25 = vsub.s32 0, %v47_v24  ;;  %v166_v45 = vsub.s32 1, %v47_v24  ;;  %v278_v59 = vsub.s32 2, %v47_v24 }
   0x5   :  { %v667_v13 = vld [vmem:[%s894_s3] sm:$0xff]   ;;  %v674_v15 = vld [vmem:[%s895_s4 + $0x10] sm:$0xff]   ;;  %v675_v16 = vld [vmem:[%s895_s4 + $0x8] sm:$0xff]  }
   0x6   :  { %v668_v14 = vld [vmem:[%s896_s0] sm:$0xff]   ;;  %v677_v18 = vld [vmem:[%s897_s5 + $0x38] sm:$0xff]   ;;  %v678_v19 = vld [vmem:[%s897_s5 + $0x30] sm:$0xff]  }
   0x7   :  { %581 = vmatpush3.bf16.msra.mxu0 %v661_v2  ;;  %601 = vmatpush3.bf16.msra.mxu1 %v670_v6  ;;  %v676_v17 = vld [vmem:[%s895_s4] sm:$0xff]   ;;  %v679_v20 = vld [vmem:[%s897_s5 + $0x28] sm:$0xff]   ;;  %v681_v22 = vld [vmem:[%s897_s5 + $0x18] sm:$0xff]  }
   0x8   :  { %582 = vmatprep.subr.bf16.mxu0 %v701_v0  ;;  %602 = vmatprep.subr.bf16.mxu1 %v701_v0  ;;  %v680_v21 = vld [vmem:[%s897_s5 + $0x20] sm:$0xff]   ;;  %v682_v37 = vld [vmem:[%s897_s5 + $0x10] sm:$0xff]   ;;  %v683_v38 = vld [vmem:[%s897_s5 + $0x8] sm:$0xff]  }
   0x9   :  { %v29_v26 = vld [vmem:[%s898_s1] sm:$0x7]  ;;  %v685_v40 = vld [vmem:[%s899_s6 + $0x38] sm:$0xff]   ;;  %v686_v41 = vld [vmem:[%s899_s6 + $0x30] sm:$0xff]  }
   0xa   :  { %v49_v27 = vrot.slane %v29_v26, %v48_v25  ;;  %v684_v39 = vld [vmem:[%s897_s5] sm:$0xff]   ;;  %v687_v42 = vld [vmem:[%s899_s6 + $0x28] sm:$0xff]   ;;  %v689_v44 = vld [vmem:[%s899_s6 + $0x18] sm:$0xff]   ;;  %v167_v46 = vrot.slane %v29_v26, %v166_v45  ;;  %v279_v60 = vrot.slane %v29_v26, %v278_v59 }
   0xb   :  { %583 = vmatpush3.bf16.msra.mxu0 %v662_v3  ;;  %603 = vmatpush3.bf16.msra.mxu1 %v671_v8  ;;  %v688_v43 = vld [vmem:[%s899_s6 + $0x20] sm:$0xff]   ;;  %v690_v56 = vld [vmem:[%s899_s6 + $0x10] sm:$0xff]   ;;  %v691_v57 = vld [vmem:[%s899_s6 + $0x8] sm:$0xff]  }
   0xc   :  { %584 = vmatprep.subr.bf16.mxu0 %v701_v0  ;;  %604 = vmatprep.subr.bf16.mxu1 %v701_v0  ;;  %v692_v58 = vld [vmem:[%s899_s6] sm:$0xff]  }
   0xf   :  { %585 = vmatpush3.bf16.msra.mxu0 %v663_v5  ;;  %605 = vmatpush3.bf16.msra.mxu1 %v672_v10 }
  0x10   :  { %586 = vmatprep.subr.bf16.mxu0 %v701_v0  ;;  %606 = vmatprep.subr.bf16.mxu1 %v701_v0 }
  0x13   :  { %587 = vmatpush3.bf16.msra.mxu0 %v664_v7  ;;  %607 = vmatpush3.bf16.msra.mxu1 %v673_v12 }
  0x14   :  { %588 = vmatprep.subr.bf16.mxu0 %v701_v0  ;;  %608 = vmatprep.subr.bf16.mxu1 %v701_v0 }
  0x17   :  { %589 = vmatpush3.bf16.msra.mxu0 %v665_v9  ;;  %609 = vmatpush3.bf16.msra.mxu1 %v674_v15 }
  0x18   :  { %590 = vmatprep.subr.bf16.mxu0 %v701_v0  ;;  %610 = vmatprep.subr.bf16.mxu1 %v701_v0 }
  0x1b   :  { %591 = vmatpush3.bf16.msra.mxu0 %v666_v11  ;;  %611 = vmatpush3.bf16.msra.mxu1 %v675_v16 }
  0x1c   :  { %592 = vmatprep.subr.bf16.mxu0 %v701_v0  ;;  %612 = vmatprep.subr.bf16.mxu1 %v701_v0 }
  0x1f   :  { %593 = vmatpush3.bf16.msra.mxu0 %v667_v13  ;;  %613 = vmatpush3.bf16.msra.mxu1 %v676_v17 }
  0x20   :  { %618 = vmatprep.subr.bf16.mxu0 %v701_v0  ;;  %638 = vmatprep.subr.bf16.mxu1 %v701_v0 }
  0x22   :  { %595 = vmatmul.mubr.bf16.vlgmr.msra.gmra.mxu0 %v668_v14 }
  0x23   :  { %634 = vmatprep.mubr.msk.bf16.mxu0 %vm702_vm0, %v701_v0  ;;  %619 = vmatpush3.bf16.msra.mxu0 %v677_v18 }
  0x24   :  { %620 = vmatprep.subr.bf16.mxu0 %v701_v0 }
  0x27   :  { %621 = vmatpush3.bf16.msra.mxu0 %v678_v19 }
  0x28   :  { %622 = vmatprep.subr.bf16.mxu0 %v701_v0 }
  0x2b   :  { %623 = vmatpush3.bf16.msra.mxu0 %v679_v20 }
  0x2c   :  { %624 = vmatprep.subr.bf16.mxu0 %v701_v0 }
  0x2f   :  { %625 = vmatpush3.bf16.msra.mxu0 %v680_v21 }
  0x30   :  { %626 = vmatprep.subr.bf16.mxu0 %v701_v0 }
  0x33   :  { %627 = vmatpush3.bf16.msra.mxu0 %v681_v22 }
  0x34   :  { %628 = vmatprep.subr.bf16.mxu0 %v701_v0 }
  0x37   :  { %629 = vmatpush3.bf16.msra.mxu0 %v682_v37 }
  0x38   :  { %630 = vmatprep.subr.bf16.mxu0 %v701_v0 }
  0x3b   :  { %631 = vmatpush3.bf16.msra.mxu0 %v683_v38 }
  0x3c   :  { %632 = vmatprep.subr.bf16.mxu0 %v701_v0 }
  0x3f   :  { %633 = vmatpush3.bf16.msra.mxu0 %v684_v39 }
  0xe2   :  { %v138_v28 = vpop.f32.mrf.mxu0 }
  0xe3   :  { %v139_v30 = vadd.f32 %v138_v28, %v49_v27 }
  0xe4   :  { %v596_v29 = vpop.f32.mrf.mxu0 }
  0xe5   :  { %v145_v34 = vmax.f32 %v139_v30, 0.0 }
  0xe6   :  { %v141_v31 = vpop.f32.mrf.mxu0 }
  0xe7   :  { %v142_v32 = vadd.f32 %v141_v31, %v49_v27 }
  0xe8   :  { %v597_v33 = vpop.f32.mrf.mxu0 }
  0xe9   :  { %v146_v35 = vmax.f32 %v142_v32, 0.0 }
  0xeb   :  { %v163_v36 = vpack.c.bf16 %v146_v35, %v145_v34 }
  0xed   :  { %615 = vmatmul.mubr.bf16.vlgmr.msra.gmra.mxu1 %v163_v36 }
  0xee   :  { %654 = vmatprep.mubr.msk.bf16.mxu1 %vm702_vm0, %v701_v0  ;;  %639 = vmatpush3.bf16.msra.mxu1 %v685_v40 }
  0xef   :  { %640 = vmatprep.subr.bf16.mxu1 %v701_v0 }
  0xf2   :  { %641 = vmatpush3.bf16.msra.mxu1 %v686_v41 }
  0xf3   :  { %642 = vmatprep.subr.bf16.mxu1 %v701_v0 }
  0xf6   :  { %643 = vmatpush3.bf16.msra.mxu1 %v687_v42 }
  0xf7   :  { %644 = vmatprep.subr.bf16.mxu1 %v701_v0 }
  0xfa   :  { %645 = vmatpush3.bf16.msra.mxu1 %v688_v43 }
  0xfb   :  { %646 = vmatprep.subr.bf16.mxu1 %v701_v0 }
  0xfe   :  { %647 = vmatpush3.bf16.msra.mxu1 %v689_v44 }
  0xff   :  { %648 = vmatprep.subr.bf16.mxu1 %v701_v0 }
 0x102   :  { %649 = vmatpush3.bf16.msra.mxu1 %v690_v56 }
 0x103   :  { %650 = vmatprep.subr.bf16.mxu1 %v701_v0 }
 0x106   :  { %651 = vmatpush3.bf16.msra.mxu1 %v691_v57 }
 0x107   :  { %652 = vmatprep.subr.bf16.mxu1 %v701_v0  ;;  %v533_v0 = vld [vmem:[%s900_s2] ss:$0 sm:$0xff] }
 0x10a   :  { %653 = vmatpush3.bf16.msra.mxu1 %v692_v58 }
 0x1ad   :  { %v250_v47 = vpop.f32.mrf.mxu1 }
 0x1ae   :  { %v251_v49 = vadd.f32 %v250_v47, %v167_v46 }
 0x1af   :  { %v616_v48 = vpop.f32.mrf.mxu1 }
 0x1b0   :  { %v257_v53 = vmax.f32 %v251_v49, 0.0 }
 0x1b1   :  { %v253_v50 = vpop.f32.mrf.mxu1 }
 0x1b2   :  { %v254_v51 = vadd.f32 %v253_v50, %v167_v46 }
 0x1b3   :  { %v617_v52 = vpop.f32.mrf.mxu1 }
 0x1b4   :  { %v258_v54 = vmax.f32 %v254_v51, 0.0 }
 0x1b6   :  { %v275_v55 = vpack.c.bf16 %v258_v54, %v257_v53 }
 0x1b8   :  { %635 = vmatmul.mubr.bf16.vlgmr.msra.gmra.mxu0 %v275_v55 }
 0x278   :  { %v362_v61 = vpop.f32.mrf.mxu0 }
 0x279   :  { %v363_v63 = vadd.f32 %v362_v61, %v279_v60 }
 0x27a   :  { %v636_v62 = vpop.f32.mrf.mxu0 }
 0x27b   :  { %v369_v4 = vmax.f32 %v363_v63, 0.0 }
 0x27c   :  { %v365_v1 = vpop.f32.mrf.mxu0 }
 0x27d   :  { %v366_v2 = vadd.f32 %v365_v1, %v279_v60 }
 0x27e   :  { %v637_v3 = vpop.f32.mrf.mxu0 }
 0x27f   :  { %v370_v5 = vmax.f32 %v366_v2, 0.0 }
 0x281   :  { %v387_v6 = vpack.c.bf16 %v370_v5, %v369_v4 }
 0x283   :  { %655 = vmatmul.mubr.bf16.vlgmr.msra.gmra.mxu1 %v387_v6 }
 0x343   :  { %v477_v7 = vpop.f32.mrf.mxu1 }
 0x344   :  { %v478_v8 = vadd.f32 %v533_v0, %v477_v7 }
 0x345   :  { %v656_v9 = vpop.f32.mrf.mxu1 }
 0x346   :  { %484 = vmax.xlane.f32.xlu0 %v478_v8 }
 0x347   :  { %v480_v10 = vpop.f32.mrf.mxu1 }
 0x348   :  { %v481_v11 = vadd.f32 %v533_v0, %v480_v10 }
 0x349   :  { %v657_v12 = vpop.f32.mrf.mxu1 }
 0x34a   :  { %486 = vmax.xlane.f32.xlu0 %v481_v11 }
 0x3cf   :  { %v485_v13 = vpop.xlane.xlu0 %484 }
 0x3d0   :  { %v488_v14 = vsub.f32 %v478_v8, %v485_v13 }
 0x3d2   :  { %v490_v15 = vmul.f32 1.442695, %v488_v14 }
 0x3d3   :  { %v487_v16 = vpop.xlane.xlu0 %486 }
 0x3d4   :  { %693 = vpow2.f32 %v490_v15  ;;  %v489_v17 = vsub.f32 %v481_v11, %v487_v16 }
 0x3d6   :  { %v492_v18 = vmul.f32 1.442695, %v489_v17 }
 0x3d8   :  { %695 = vpow2.f32 %v492_v18 }
 0x3e1   :  { %v694_v19 = vpop.eup %693 }
 0x3e2   :  { %494 = vadd.xlane.f32.xlu1 %v694_v19 }
 0x3e5   :  { %v696_v20 = vpop.eup %695 }
 0x3e6   :  { %496 = vadd.xlane.f32.xlu1 %v696_v20 }
 0x46b   :  { %v495_v21 = vpop.xlane.xlu1 %494 }
 0x46c   :  { %697 = vrcp.f32 %v495_v21 }
 0x46f   :  { %v497_v22 = vpop.xlane.xlu1 %496 }
 0x470   :  { %699 = vrcp.f32 %v497_v22 }
 0x479   :  { %v698_v23 = vpop.eup %697 }
 0x47a   :  { %v499_v24 = vmul.f32 %v698_v23, %v694_v19 }
 0x47c   :  { %502 = vst [vmem:[%s901_s7] sm:$0xff] %v499_v24 }
 0x47d   :  { %v700_v25 = vpop.eup %699 }
 0x47e   :  { %v501_v26 = vmul.f32 %v700_v25, %v696_v20 }
 0x480   :  { %503 = vst [vmem:[%s901_s7 + $0x8] sm:$0xff] %v501_v26 }

// kernel: mlp_forward.1
= control target key start
LH: loop header
LB: loop body
LE: loop exit
PB: predicated region body
PF: predicated region fallthrough
CT: control target
= control target key end

     0   :  { %v701_v0 = vmov 0.0   ;;  %vm702_vm0 = vmmov 0   ;;  %v46_v23 = vlaneseq  ;;  %s894_s3 = inlined_call_operand.vmem [shape: bf16[128,128], index: 3, kind: input, shape index: {}]   ;;  %s895_s4 = inlined_call_operand.vmem [shape: bf16[128,128], index: 4, kind: input, shape index: {}]   ;;  %s896_s0 = inlined_call_operand.vmem [shape: bf16[16,128], index: 0, kind: input, shape index: {}]   ;;  %s897_s5 = inlined_call_operand.vmem [shape: bf16[128,128], index: 5, kind: input, shape index: {}]   ;;  %s898_s1 = inlined_call_operand.vmem [shape: f32[3,128], index: 1, kind: input, shape index: {}]   ;;  %s899_s6 = inlined_call_operand.vmem [shape: bf16[128,128], index: 6, kind: input, shape index: {}]   ;;  %s900_s2 = inlined_call_operand.vmem [shape: f32[1,128], index: 2, kind: input, shape index: {}]   ;;  %s901_s7 = inlined_call_operand.vmem [shape: f32[16,128], index: 7, kind: output, shape index: {}]  }
   0x1   :  { %578 = vmatprep.subr.bf16.mxu0 %v701_v0  ;;  %v660_v1 = vld [vmem:[%s894_s3 + $0x38] sm:$0xff]   ;;  %594 = vmatprep.mubr.msk.bf16.mxu0 %vm702_vm0, %v701_v0  ;;  %v661_v2 = vld [vmem:[%s894_s3 + $0x30] sm:$0xff]   ;;  %v662_v3 = vld [vmem:[%s894_s3 + $0x28] sm:$0xff]  }
   0x2   :  { %598 = vmatprep.subr.bf16.mxu1 %v701_v0  ;;  %614 = vmatprep.mubr.msk.bf16.mxu1 %vm702_vm0, %v701_v0  ;;  %v669_v4 = vld [vmem:[%s895_s4 + $0x38] sm:$0xff]   ;;  %v663_v5 = vld [vmem:[%s894_s3 + $0x20] sm:$0xff]   ;;  %v670_v6 = vld [vmem:[%s895_s4 + $0x30] sm:$0xff]   ;;  %v47_v24 = vshrl.u32 %v46_v23, 7 }
   0x3   :  { %579 = vmatpush3.bf16.msra.mxu0 %v660_v1  ;;  %599 = vmatpush3.bf16.msra.mxu1 %v669_v4  ;;  %v664_v7 = vld [vmem:[%s894_s3 + $0x18] sm:$0xff]   ;;  %v671_v8 = vld [vmem:[%s895_s4 + $0x28] sm:$0xff]   ;;  %v665_v9 = vld [vmem:[%s894_s3 + $0x10] sm:$0xff]  }
   0x4   :  { %580 = vmatprep.subr.bf16.mxu0 %v701_v0  ;;  %600 = vmatprep.subr.bf16.mxu1 %v701_v0  ;;  %v672_v10 = vld [vmem:[%s895_s4 + $0x20] sm:$0xff]   ;;  %v666_v11 = vld [vmem:[%s894_s3 + $0x8] sm:$0xff]   ;;  %v673_v12 = vld [vmem:[%s895_s4 + $0x18] sm:$0xff]   ;;  %v48_v25 = vsub.s32 0, %v47_v24  ;;  %v166_v45 = vsub.s32 1, %v47_v24  ;;  %v278_v59 = vsub.s32 2, %v47_v24 }
   0x5   :  { %v667_v13 = vld [vmem:[%s894_s3] sm:$0xff]   ;;  %v674_v15 = vld [vmem:[%s895_s4 + $0x10] sm:$0xff]   ;;  %v675_v16 = vld [vmem:[%s895_s4 + $0x8] sm:$0xff]  }
   0x6   :  { %v668_v14 = vld [vmem:[%s896_s0] sm:$0xff]   ;;  %v677_v18 = vld [vmem:[%s897_s5 + $0x38] sm:$0xff]   ;;  %v678_v19 = vld [vmem:[%s897_s5 + $0x30] sm:$0xff]  }
   0x7   :  { %581 = vmatpush3.bf16.msra.mxu0 %v661_v2  ;;  %601 = vmatpush3.bf16.msra.mxu1 %v670_v6  ;;  %v676_v17 = vld [vmem:[%s895_s4] sm:$0xff]   ;;  %v679_v20 = vld [vmem:[%s897_s5 + $0x28] sm:$0xff]   ;;  %v681_v22 = vld [vmem:[%s897_s5 + $0x18] sm:$0xff]  }
   0x8   :  { %582 = vmatprep.subr.bf16.mxu0 %v701_v0  ;;  %602 = vmatprep.subr.bf16.mxu1 %v701_v0  ;;  %v680_v21 = vld [vmem:[%s897_s5 + $0x20] sm:$0xff]   ;;  %v682_v37 = vld [vmem:[%s897_s5 + $0x10] sm:$0xff]   ;;  %v683_v38 = vld [vmem:[%s897_s5 + $0x8] sm:$0xff]  }
   0x9   :  { %v29_v26 = vld [vmem:[%s898_s1] sm:$0x7]  ;;  %v685_v40 = vld [vmem:[%s899_s6 + $0x38] sm:$0xff]   ;;  %v686_v41 = vld [vmem:[%s899_s6 + $0x30] sm:$0xff]  }
   0xa   :  { %v49_v27 = vrot.slane %v29_v26, %v48_v25  ;;  %v684_v39 = vld [vmem:[%s897_s5] sm:$0xff]   ;;  %v687_v42 = vld [vmem:[%s899_s6 + $0x28] sm:$0xff]   ;;  %v689_v44 = vld [vmem:[%s899_s6 + $0x18] sm:$0xff]   ;;  %v167_v46 = vrot.slane %v29_v26, %v166_v45  ;;  %v279_v60 = vrot.slane %v29_v26, %v278_v59 }
   0xb   :  { %583 = vmatpush3.bf16.msra.mxu0 %v662_v3  ;;  %603 = vmatpush3.bf16.msra.mxu1 %v671_v8  ;;  %v688_v43 = vld [vmem:[%s899_s6 + $0x20] sm:$0xff]   ;;  %v690_v56 = vld [vmem:[%s899_s6 + $0x10] sm:$0xff]   ;;  %v691_v57 = vld [vmem:[%s899_s6 + $0x8] sm:$0xff]  }
   0xc   :  { %584 = vmatprep.subr.bf16.mxu0 %v701_v0  ;;  %604 = vmatprep.subr.bf16.mxu1 %v701_v0  ;;  %v692_v58 = vld [vmem:[%s899_s6] sm:$0xff]  }
   0xf   :  { %585 = vmatpush3.bf16.msra.mxu0 %v663_v5  ;;  %605 = vmatpush3.bf16.msra.mxu1 %v672_v10 }
  0x10   :  { %586 = vmatprep.subr.bf16.mxu0 %v701_v0  ;;  %606 = vmatprep.subr.bf16.mxu1 %v701_v0 }
  0x13   :  { %587 = vmatpush3.bf16.msra.mxu0 %v664_v7  ;;  %607 = vmatpush3.bf16.msra.mxu1 %v673_v12 }
  0x14   :  { %588 = vmatprep.subr.bf16.mxu0 %v701_v0  ;;  %608 = vmatprep.subr.bf16.mxu1 %v701_v0 }
  0x17   :  { %589 = vmatpush3.bf16.msra.mxu0 %v665_v9  ;;  %609 = vmatpush3.bf16.msra.mxu1 %v674_v15 }
  0x18   :  { %590 = vmatprep.subr.bf16.mxu0 %v701_v0  ;;  %610 = vmatprep.subr.bf16.mxu1 %v701_v0 }
  0x1b   :  { %591 = vmatpush3.bf16.msra.mxu0 %v666_v11  ;;  %611 = vmatpush3.bf16.msra.mxu1 %v675_v16 }
  0x1c   :  { %592 = vmatprep.subr.bf16.mxu0 %v701_v0  ;;  %612 = vmatprep.subr.bf16.mxu1 %v701_v0 }
  0x1f   :  { %593 = vmatpush3.bf16.msra.mxu0 %v667_v13  ;;  %613 = vmatpush3.bf16.msra.mxu1 %v676_v17 }
  0x20   :  { %618 = vmatprep.subr.bf16.mxu0 %v701_v0  ;;  %638 = vmatprep.subr.bf16.mxu1 %v701_v0 }
  0x22   :  { %595 = vmatmul.mubr.bf16.vlgmr.msra.gmra.mxu0 %v668_v14 }
  0x23   :  { %634 = vmatprep.mubr.msk.bf16.mxu0 %vm702_vm0, %v701_v0  ;;  %619 = vmatpush3.bf16.msra.mxu0 %v677_v18 }
  0x24   :  { %620 = vmatprep.subr.bf16.mxu0 %v701_v0 }
  0x27   :  { %621 = vmatpush3.bf16.msra.mxu0 %v678_v19 }
  0x28   :  { %622 = vmatprep.subr.bf16.mxu0 %v701_v0 }
  0x2b   :  { %623 = vmatpush3.bf16.msra.mxu0 %v679_v20 }
  0x2c   :  { %624 = vmatprep.subr.bf16.mxu0 %v701_v0 }
  0x2f   :  { %625 = vmatpush3.bf16.msra.mxu0 %v680_v21 }
  0x30   :  { %626 = vmatprep.subr.bf16.mxu0 %v701_v0 }
  0x33   :  { %627 = vmatpush3.bf16.msra.mxu0 %v681_v22 }
  0x34   :  { %628 = vmatprep.subr.bf16.mxu0 %v701_v0 }
  0x37   :  { %629 = vmatpush3.bf16.msra.mxu0 %v682_v37 }
  0x38   :  { %630 = vmatprep.subr.bf16.mxu0 %v701_v0 }
  0x3b   :  { %631 = vmatpush3.bf16.msra.mxu0 %v683_v38 }
  0x3c   :  { %632 = vmatprep.subr.bf16.mxu0 %v701_v0 }
  0x3f   :  { %633 = vmatpush3.bf16.msra.mxu0 %v684_v39 }
  0xe2   :  { %v138_v28 = vpop.f32.mrf.mxu0 }
  0xe3   :  { %v139_v30 = vadd.f32 %v138_v28, %v49_v27 }
  0xe4   :  { %v596_v29 = vpop.f32.mrf.mxu0 }
  0xe5   :  { %v145_v34 = vmax.f32 %v139_v30, 0.0 }
  0xe6   :  { %v141_v31 = vpop.f32.mrf.mxu0 }
  0xe7   :  { %v142_v32 = vadd.f32 %v141_v31, %v49_v27 }
  0xe8   :  { %v597_v33 = vpop.f32.mrf.mxu0 }
  0xe9   :  { %v146_v35 = vmax.f32 %v142_v32, 0.0 }
  0xeb   :  { %v163_v36 = vpack.c.bf16 %v146_v35, %v145_v34 }
  0xed   :  { %615 = vmatmul.mubr.bf16.vlgmr.msra.gmra.mxu1 %v163_v36 }
  0xee   :  { %654 = vmatprep.mubr.msk.bf16.mxu1 %vm702_vm0, %v701_v0  ;;  %639 = vmatpush3.bf16.msra.mxu1 %v685_v40 }
  0xef   :  { %640 = vmatprep.subr.bf16.mxu1 %v701_v0 }
  0xf2   :  { %641 = vmatpush3.bf16.msra.mxu1 %v686_v41 }
  0xf3   :  { %642 = vmatprep.subr.bf16.mxu1 %v701_v0 }
  0xf6   :  { %643 = vmatpush3.bf16.msra.mxu1 %v687_v42 }
  0xf7   :  { %644 = vmatprep.subr.bf16.mxu1 %v701_v0 }
  0xfa   :  { %645 = vmatpush3.bf16.msra.mxu1 %v688_v43 }
  0xfb   :  { %646 = vmatprep.subr.bf16.mxu1 %v701_v0 }
  0xfe   :  { %647 = vmatpush3.bf16.msra.mxu1 %v689_v44 }
  0xff   :  { %648 = vmatprep.subr.bf16.mxu1 %v701_v0 }
 0x102   :  { %649 = vmatpush3.bf16.msra.mxu1 %v690_v56 }
 0x103   :  { %650 = vmatprep.subr.bf16.mxu1 %v701_v0 }
 0x106   :  { %651 = vmatpush3.bf16.msra.mxu1 %v691_v57 }
 0x107   :  { %652 = vmatprep.subr.bf16.mxu1 %v701_v0  ;;  %v533_v0 = vld [vmem:[%s900_s2] ss:$0 sm:$0xff] }
 0x10a   :  { %653 = vmatpush3.bf16.msra.mxu1 %v692_v58 }
 0x1ad   :  { %v250_v47 = vpop.f32.mrf.mxu1 }
 0x1ae   :  { %v251_v49 = vadd.f32 %v250_v47, %v167_v46 }
 0x1af   :  { %v616_v48 = vpop.f32.mrf.mxu1 }
 0x1b0   :  { %v257_v53 = vmax.f32 %v251_v49, 0.0 }
 0x1b1   :  { %v253_v50 = vpop.f32.mrf.mxu1 }
 0x1b2   :  { %v254_v51 = vadd.f32 %v253_v50, %v167_v46 }
 0x1b3   :  { %v617_v52 = vpop.f32.mrf.mxu1 }
 0x1b4   :  { %v258_v54 = vmax.f32 %v254_v51, 0.0 }
 0x1b6   :  { %v275_v55 = vpack.c.bf16 %v258_v54, %v257_v53 }
 0x1b8   :  { %635 = vmatmul.mubr.bf16.vlgmr.msra.gmra.mxu0 %v275_v55 }
 0x278   :  { %v362_v61 = vpop.f32.mrf.mxu0 }
 0x279   :  { %v363_v63 = vadd.f32 %v362_v61, %v279_v60 }
 0x27a   :  { %v636_v62 = vpop.f32.mrf.mxu0 }
 0x27b   :  { %v369_v4 = vmax.f32 %v363_v63, 0.0 }
 0x27c   :  { %v365_v1 = vpop.f32.mrf.mxu0 }
 0x27d   :  { %v366_v2 = vadd.f32 %v365_v1, %v279_v60 }
 0x27e   :  { %v637_v3 = vpop.f32.mrf.mxu0 }
 0x27f   :  { %v370_v5 = vmax.f32 %v366_v2, 0.0 }
 0x281   :  { %v387_v6 = vpack.c.bf16 %v370_v5, %v369_v4 }
 0x283   :  { %655 = vmatmul.mubr.bf16.vlgmr.msra.gmra.mxu1 %v387_v6 }
 0x343   :  { %v477_v7 = vpop.f32.mrf.mxu1 }
 0x344   :  { %v478_v8 = vadd.f32 %v533_v0, %v477_v7 }
 0x345   :  { %v656_v9 = vpop.f32.mrf.mxu1 }
 0x346   :  { %484 = vmax.xlane.f32.xlu0 %v478_v8 }
 0x347   :  { %v480_v10 = vpop.f32.mrf.mxu1 }
 0x348   :  { %v481_v11 = vadd.f32 %v533_v0, %v480_v10 }
 0x349   :  { %v657_v12 = vpop.f32.mrf.mxu1 }
 0x34a   :  { %486 = vmax.xlane.f32.xlu0 %v481_v11 }
 0x3cf   :  { %v485_v13 = vpop.xlane.xlu0 %484 }
 0x3d0   :  { %v488_v14 = vsub.f32 %v478_v8, %v485_v13 }
 0x3d2   :  { %v490_v15 = vmul.f32 1.442695, %v488_v14 }
 0x3d3   :  { %v487_v16 = vpop.xlane.xlu0 %486 }
 0x3d4   :  { %693 = vpow2.f32 %v490_v15  ;;  %v489_v17 = vsub.f32 %v481_v11, %v487_v16 }
 0x3d6   :  { %v492_v18 = vmul.f32 1.442695, %v489_v17 }
 0x3d8   :  { %695 = vpow2.f32 %v492_v18 }
 0x3e1   :  { %v694_v19 = vpop.eup %693 }
 0x3e2   :  { %494 = vadd.xlane.f32.xlu1 %v694_v19 }
 0x3e5   :  { %v696_v20 = vpop.eup %695 }
 0x3e6   :  { %496 = vadd.xlane.f32.xlu1 %v696_v20 }
 0x46b   :  { %v495_v21 = vpop.xlane.xlu1 %494 }
 0x46c   :  { %697 = vrcp.f32 %v495_v21 }
 0x46f   :  { %v497_v22 = vpop.xlane.xlu1 %496 }
 0x470   :  { %699 = vrcp.f32 %v497_v22 }
 0x479   :  { %v698_v23 = vpop.eup %697 }
 0x47a   :  { %v499_v24 = vmul.f32 %v698_v23, %v694_v19 }
 0x47c   :  { %502 = vst [vmem:[%s901_s7] sm:$0xff] %v499_v24 }
 0x47d   :  { %v700_v25 = vpop.eup %699 }
 0x47e   :  { %v501_v26 = vmul.f32 %v700_v25, %v696_v20 }
 0x480   :  { %503 = vst [vmem:[%s901_s7 + $0x8] sm:$0xff] %v501_v26 }

</bundles_post_ra>
